<compile_context>
chip_gen: v5e
topology: v5e:2x2
jax: 0.10.0
libtpu: 0.0.40
codegen_flags: <defaults>
</compile_context>

<pallas_src>
import jax
import jax.numpy as jnp
import numpy as np
from jax.experimental import pallas as pl
from jax.experimental.pallas import tpu as pltpu


def _round_up(x, m):
    return (x + m - 1) // m * m


# ----------------------------- Pallas kernels ------------------------------ #

def _fc_mask_kernel(maskf_ref, enc_ref, w_ref, b_ref, out_ref):
    # maskf_ref: [TM, 1] f32 (0 for pad tokens) ; enc_ref: [TM, Hp]
    # w_ref: [Hp, Vp] ; b_ref: [1, Vp] ; out_ref: [TM, Vp]
    enc = enc_ref[...] * maskf_ref[...]              # enc.masked_fill(x==0, 0)
    out_ref[...] = (
        jnp.dot(enc, w_ref[...], preferred_element_type=jnp.float32) + b_ref[...]
    )


def _viterbi_kernel(emis_ref, start_ref, trans_ref, end_ref, out_ref, hist_ref):
    # emis_ref: [T, TB, Vp] (time-major) ; start/end: [1, Vp] ; trans: [Vp, Vp]
    # out_ref: [TB, T] f32 decoded tags ; hist_ref: [T, TB, Vp] int32 scratch
    T, TB, Vp = emis_ref.shape

    trans_b = trans_ref[...][None, :, :]             # hoisted broadcast (1, Vp, Vp)
    prev_iota = jax.lax.broadcasted_iota(jnp.int32, (TB, Vp, Vp), 1)  # prev-tag idx
    lane_iota = jax.lax.broadcasted_iota(jnp.int32, (TB, Vp), 1)      # tag idx

    # ---- forward pass (max-product) ----
    score0 = start_ref[...] + emis_ref[0]            # [TB, Vp]

    def fwd_step(t, score):
        # only one timestep of emissions live at a time
        nxt = score[:, :, None] + trans_b + emis_ref[t][:, None, :]   # [TB, Vp, Vp]
        mx = jnp.max(nxt, axis=1)                                     # [TB, Vp]
        # first-argmax along the previous-tag axis (torchcrf tie-breaking)
        idx = jnp.min(jnp.where(nxt >= mx[:, None, :], prev_iota, Vp), axis=1)
        hist_ref[t] = idx                                             # backptr for time t
        return mx

    score = jax.lax.fori_loop(1, T, fwd_step, score0)
    score = score + end_ref[...]

    mxf = jnp.max(score, axis=-1, keepdims=True)
    cur = jnp.min(jnp.where(score >= mxf, lane_iota, Vp),
                  axis=-1, keepdims=True)            # [TB, 1] best last tag

    # ---- backtrace: build one lane-dense [TB, T] result, single store ----
    t_iota = jax.lax.broadcasted_iota(jnp.int32, (TB, T), 1)
    tags0 = jnp.where(t_iota == T - 1, cur.astype(jnp.float32), 0.0)

    def bwd_step(i, carry):
        cur_tag, tags = carry
        t = T - 2 - i
        bp = hist_ref[t + 1]                                          # [TB, Vp]
        cur_tag = jnp.sum(jnp.where(lane_iota == cur_tag, bp, 0),
                          axis=-1, keepdims=True)                     # [TB, 1]
        tags = jnp.where(t_iota == t, cur_tag.astype(jnp.float32), tags)
        return cur_tag, tags

    _, tags = jax.lax.fori_loop(0, T - 1, bwd_step, (cur, tags0))
    out_ref[...] = tags


# ------------------------------ JAX wrappers -------------------------------- #

def fc_with_mask(x_ids, enc, fc_w, fc_b, tm=512):
    """Masked fc.  Returns padded logits [BTp, Vp] plus (Hp, Vp)."""
    B, T = x_ids.shape
    H = enc.shape[-1]
    V = fc_w.shape[-1]
    BT = B * T

    Hp = _round_up(H, 128)                 # MXU-full contraction width
    Vp = _round_up(V, 128)                 # lane-dense output width
    TM = min(tm, _round_up(BT, 8))         # row tile (~512 for real sizes)
    BTp = _round_up(BT, TM)

    # f32 multiplier mask instead of int compare+select inside the kernel.
    maskf = (x_ids != 0).astype(jnp.float32).reshape(BT, 1)
    maskf = jnp.pad(maskf, ((0, BTp - BT), (0, 0)))
    enc2 = jnp.pad(enc.reshape(BT, H).astype(jnp.float32),
                   ((0, BTp - BT), (0, Hp - H)))
    w = jnp.pad(fc_w.astype(jnp.float32), ((0, Hp - H), (0, Vp - V)))
    b = jnp.pad(fc_b.astype(jnp.float32), (0, Vp - V)).reshape(1, Vp)
    # TODO(synk): for v5e/v6e one could cast enc2/w to bf16 here (keeping f32
    # accumulation) for 2x MXU throughput if the accuracy budget allows.

    logits_p = pl.pallas_call(
        _fc_mask_kernel,
        out_shape=jax.ShapeDtypeStruct((BTp, Vp), jnp.float32),
        grid=(BTp // TM,),
        in_specs=[
            pl.BlockSpec((TM, 1), lambda i: (i, 0)),      # mask tile
            pl.BlockSpec((TM, Hp), lambda i: (i, 0)),     # enc tile (pipelined)
            pl.BlockSpec((Hp, Vp), lambda i: (0, 0)),     # weight stays resident
            pl.BlockSpec((1, Vp), lambda i: (0, 0)),      # bias stays resident
        ],
        out_specs=pl.BlockSpec((TM, Vp), lambda i: (i, 0)),
        compiler_params=pltpu.CompilerParams(
            dimension_semantics=("parallel",)),
    )(maskf, enc2, w, b)
    return logits_p, Vp


def crf_decode(logits_pad, B, T, V, start, trans, end):
    """Viterbi decode (mask=None).  logits_pad: [BTp, Vp] from fc_with_mask."""
    Vp = logits_pad.shape[-1]
    TB = B if B <= 8 else 8
    Bp = _round_up(B, TB)

    emis = logits_pad[: B * T].reshape(B, T, Vp)
    if Bp != B:
        emis = jnp.pad(emis, ((0, Bp - B), (0, 0), (0, 0)))
    # time-major so the kernel's fori_loop indexes the leading (cheap) axis
    emis_t = jnp.transpose(emis, (1, 0, 2))              # [T, Bp, Vp]

    neg = jnp.float32(-1e30)                             # finite pad (no inf/NaN)
    start_p = jnp.full((1, Vp), neg, jnp.float32).at[0, :V].set(start)
    end_p = jnp.full((1, Vp), neg, jnp.float32).at[0, :V].set(end)
    trans_p = jnp.full((Vp, Vp), neg, jnp.float32).at[:V, :V].set(trans)

    out = pl.pallas_call(
        _viterbi_kernel,
        out_shape=jax.ShapeDtypeStruct((Bp, T), jnp.float32),
        grid=(Bp // TB,),
        in_specs=[
            pl.BlockSpec((T, TB, Vp), lambda i: (0, i, 0)),  # batch-tiled emissions
            pl.BlockSpec((1, Vp), lambda i: (0, 0)),
            pl.BlockSpec((Vp, Vp), lambda i: (0, 0)),
            pl.BlockSpec((1, Vp), lambda i: (0, 0)),
        ],
        out_specs=pl.BlockSpec((TB, T), lambda i: (i, 0)),
        scratch_shapes=[pltpu.VMEM((T, TB, Vp), jnp.int32)],  # backpointer history
        compiler_params=pltpu.CompilerParams(
            dimension_semantics=("parallel",)),
    )(emis_t, start_p, trans_p, end_p)
    return out[:B]


def netcrf_forward(x_ids, enc, fc_w, fc_b, crf_start, crf_trans, crf_end):
    """NetCRF.forward(x) with y=None: returns (feats, y_hat)."""
    B, T = x_ids.shape
    V = fc_w.shape[-1]
    logits_pad, _ = fc_with_mask(x_ids, enc, fc_w, fc_b)       # Net.forward -> logits
    feats = logits_pad[: B * T, :V].reshape(B, T, V)
    y_hat = crf_decode(logits_pad, B, T, V, crf_start, crf_trans, crf_end)
    return feats, y_hat


# ----------------------------- pure-JAX reference --------------------------- #

def _ref_forward(x_ids, enc, fc_w, fc_b, start, trans, end):
    mask = (x_ids == 0)[..., None]
    encm = jnp.where(mask, 0.0, enc)
    feats = encm @ fc_w + fc_b
    B, T, V = feats.shape
    score = start[None] + feats[:, 0]
    hist = []
    for t in range(1, T):
        nxt = score[:, :, None] + trans[None] + feats[:, t][:, None, :]
        hist.append(jnp.argmax(nxt, axis=1))
        score = jnp.max(nxt, axis=1)
    score = score + end[None]
    cur = jnp.argmax(score, axis=-1)
    tags = [cur]
    for t in range(T - 2, -1, -1):
        cur = jnp.take_along_axis(hist[t], cur[:, None], axis=1)[:, 0]
        tags.append(cur)
    tags.reverse()
    return feats, jnp.stack(tags, axis=1).astype(jnp.float32)


# ---------------------------------- main ------------------------------------ #

if __name__ == "__main__":
    B, T, H, V = 2, 8, 32, 8      # batch, seq, lin_dim (fc in-features), vocab_size (tags)
    TOKENS = 64                   # synthetic token vocabulary for the encoder stand-in

    key = jax.random.PRNGKey(0)
    k = jax.random.split(key, 8)

    x = jax.random.randint(k[0], (B, T), 1, TOKENS, dtype=jnp.int32)
    x = x.at[:, -2:].set(0)       # trailing padding (token id 0) to exercise the mask

    # TODO(synk): the pretrained BERT encoder (and optional top bi-LSTM) has no clean
    # Pallas equivalent here; a deterministic embedding table stands in for it.
    emb_table = 0.1 * jax.random.normal(k[1], (TOKENS, H), jnp.float32)
    enc = emb_table[x]            # [B, T, H] glue gather in plain JAX

    # fc = nn.Linear(lin_dim, vocab_size); stored as [H, V] (transposed vs torch)
    fc_w = 0.1 * jax.random.normal(k[2], (H, V), jnp.float32)
    fc_b = 0.1 * jax.random.normal(k[3], (V,), jnp.float32)

    # CRF(vocab_size, batch_first=True) params: uniform(-0.1, 0.1) like torchcrf reset
    crf_start = jax.random.uniform(k[4], (V,), jnp.float32, -0.1, 0.1)
    crf_end = jax.random.uniform(k[5], (V,), jnp.float32, -0.1, 0.1)
    crf_trans = jax.random.uniform(k[6], (V, V), jnp.float32, -0.1, 0.1)

    feats, y_hat = netcrf_forward(x, enc, fc_w, fc_b, crf_start, crf_trans, crf_end)
    jax.block_until_ready((feats, y_hat))

    feats_ref, y_hat_ref = _ref_forward(x, enc, fc_w, fc_b, crf_start, crf_trans, crf_end)
    np.testing.assert_allclose(np.asarray(feats), np.asarray(feats_ref), rtol=1e-5, atol=1e-5)
    np.testing.assert_array_equal(np.asarray(y_hat), np.asarray(y_hat_ref))

    print("KERNEL_OK")
</pallas_src>

<mosaic_0001>
module attributes {stable_mosaic.version = 11 : i64} {
  func.func @_fc_mask_kernel(%arg0: i32, %arg1: memref<16x1xf32, #tpu.memory_space<vmem>>, %arg2: memref<16x128xf32, #tpu.memory_space<vmem>>, %arg3: memref<128x128xf32, #tpu.memory_space<vmem>>, %arg4: memref<1x128xf32, #tpu.memory_space<vmem>>, %arg5: memref<16x128xf32, #tpu.memory_space<vmem>>) attributes {dimension_semantics = [#tpu.dimension_semantics<parallel>], iteration_bounds = array<i64: 1>, scalar_prefetch = 0 : i64, scratch_operands = 0 : i64, tpu.core_type = #tpu.core_type<tc>, window_params = [{transform_indices = @transform_0, window_bounds = array<i64: 16, 1>}, {transform_indices = @transform_1, window_bounds = array<i64: 16, 128>}, {pipeline_mode = #tpu.pipeline_mode<synchronous>, transform_indices = @transform_2, window_bounds = array<i64: 128, 128>}, {pipeline_mode = #tpu.pipeline_mode<synchronous>, transform_indices = @transform_3, window_bounds = array<i64: 1, 128>}, {transform_indices = @transform_4, window_bounds = array<i64: 16, 128>}]} {
    %c0 = arith.constant 0 : index
    %c0_0 = arith.constant 0 : index
    %0 = vector.load %arg2[%c0, %c0_0] : memref<16x128xf32, #tpu.memory_space<vmem>>, vector<16x128xf32>
    %c0_1 = arith.constant 0 : index
    %c0_2 = arith.constant 0 : index
    %1 = vector.load %arg1[%c0_1, %c0_2] : memref<16x1xf32, #tpu.memory_space<vmem>>, vector<16x1xf32>
    %2 = vector.broadcast %1 : vector<16x1xf32> to vector<16x128xf32>
    %3 = arith.mulf %0, %2 : vector<16x128xf32>
    %c0_3 = arith.constant 0 : index
    %c0_4 = arith.constant 0 : index
    %4 = vector.load %arg3[%c0_3, %c0_4] : memref<128x128xf32, #tpu.memory_space<vmem>>, vector<128x128xf32>
    %cst = arith.constant dense<0.000000e+00> : vector<16x128xf32>
    %5 = tpu.matmul %3, %4, %cst {dimension_numbers = #tpu.dot_dimension_numbers<[1], [0], [0], [1], [0, 0, 1, 1], [], []>} : vector<16x128xf32>, vector<128x128xf32>, vector<16x128xf32> -> vector<16x128xf32>
    %c0_5 = arith.constant 0 : index
    %c0_6 = arith.constant 0 : index
    %6 = vector.load %arg4[%c0_5, %c0_6] : memref<1x128xf32, #tpu.memory_space<vmem>>, vector<1x128xf32>
    %7 = vector.broadcast %6 : vector<1x128xf32> to vector<16x128xf32>
    %8 = arith.addf %5, %7 : vector<16x128xf32>
    %c0_7 = arith.constant 0 : index
    %c0_8 = arith.constant 0 : index
    %9 = vector.load %arg5[%c0_7, %c0_8] : memref<16x128xf32, #tpu.memory_space<vmem>>, vector<16x128xf32>
    tpu.vector_store %arg5[%c0_7, %c0_8], %8 {strides = array<i32>} : memref<16x128xf32, #tpu.memory_space<vmem>>, vector<16x128xf32>,
    return
  }
  func.func @transform_0(%arg0: i32) -> (i32, i32) {
    %c0_i32 = arith.constant 0 : i32
    %c0_i32_0 = arith.constant 0 : i32
    return %arg0, %c0_i32 : i32, i32
  }
  func.func @transform_1(%arg0: i32) -> (i32, i32) {
    %c0_i32 = arith.constant 0 : i32
    %c0_i32_0 = arith.constant 0 : i32
    return %arg0, %c0_i32 : i32, i32
  }
  func.func @transform_2(%arg0: i32) -> (i32, i32) {
    %c0_i32 = arith.constant 0 : i32
    %c0_i32_0 = arith.constant 0 : i32
    %c0_i32_1 = arith.constant 0 : i32
    return %c0_i32, %c0_i32_0 : i32, i32
  }
  func.func @transform_3(%arg0: i32) -> (i32, i32) {
    %c0_i32 = arith.constant 0 : i32
    %c0_i32_0 = arith.constant 0 : i32
    %c0_i32_1 = arith.constant 0 : i32
    return %c0_i32, %c0_i32_0 : i32, i32
  }
  func.func @transform_4(%arg0: i32) -> (i32, i32) {
    %c0_i32 = arith.constant 0 : i32
    %c0_i32_0 = arith.constant 0 : i32
    return %arg0, %c0_i32 : i32, i32
  }
}

</mosaic_0001>

<bundles_post_ra>
// kernel: tpu_custom_call.1
= control target key start
LH: loop header
LB: loop body
LE: loop exit
PB: predicated region body
PF: predicated region fallthrough
CT: control target
= control target key end

     0   :  { %9 = vsyncpa [#allocation3], 0  ;;  %s246_s0 = inlined_call_operand.vmem [shape: f32[16,1], index: 0, kind: input, shape index: {}]   ;;  %s247_s1 = inlined_call_operand.vmem [shape: f32[16,128], index: 1, kind: input, shape index: {}]   ;;  %s248_s2 = inlined_call_operand.hbm [shape: f32[128,128], index: 2, kind: input, shape index: {}]   ;;  %s249_s3 = inlined_call_operand.vmem [shape: f32[1,128], index: 3, kind: input, shape index: {}]   ;;  %s250_s4 = inlined_call_operand.hbm [shape: f32[16,128], index: 4, kind: output, shape index: {}]  }
   0x1   :  { %10 = vsyncpa [#allocation4], 0  ;;  %s19_s17 = sshll.u32 %s248_s2, 4  ;;  %s189_s18 = smov [#allocation2]   ;;  %s20_s17 = int_to_ptr.hbm [resolvable:$true] %s19_s17 }
   0x2   :  { %s21_s19 = sshll.u32 %s189_s18, 4  ;;  %s190_s20 = smov 128   ;;  %s22_s19 = int_to_ptr.vmem [resolvable:$true] %s21_s19 }
   0x3   :  { %s191_s21 = smov 8  }
   0x4   :  { %27 = dma.hbm_to_vmem [thread:$0]  %s20_s17, 2048, %s22_s19, [#allocation3], %s190_s20, %s190_s20, %s191_s21  }
   0x5   :  { %185 = dma.done.wait [#allocation3], 2048  }
   0x6   :  { %186 = vsyncadd [#allocation3], 4294965248  ;;  %v192_v0 = vmov 0   ;;  %v36_v1 = vld [vmem:[%s246_s0] sm:$0xff]  ;;  %v65_v2 = vld [vmem:[#allocation2 + $0x78] sm:$0xff]  ;;  %s193_s30 = smov [#allocation5]  }
   0x7   :  { %135 = vset.pattern.permute.xlu0 %v192_v0  ;;  %70 = vmatpush.msra.mxu0 %v65_v2  ;;  %v64_v3 = vld [vmem:[#allocation2 + $0x70] sm:$0xff]  ;;  %v63_v4 = vld [vmem:[#allocation2 + $0x68] sm:$0xff]  ;;  %v62_v5 = vld [vmem:[#allocation2 + $0x60] sm:$0xff]  ;;  %s99_s5 = sshll.u32 %s193_s30, 4  ;;  %s101_s8 = sshll.u32 %s250_s4, 4  ;;  %s100_s5 = int_to_ptr.vmem [resolvable:$true] %s99_s5  ;;  %s102_s8 = int_to_ptr.hbm [resolvable:$true] %s101_s8 }
   0x8   :  { %40 = vperm.xlu0 %135, %v36_v1   ;;  %114 = vmatpush.msra.mxu1 %v65_v2  ;;  %v37_v6 = vld [vmem:[%s246_s0 + $0x8] sm:$0xff]  ;;  %v61_v7 = vld [vmem:[#allocation2 + $0x58] sm:$0xff]  ;;  %v60_v8 = vld [vmem:[#allocation2 + $0x50] sm:$0xff] }
   0x9   :  { %71 = vmatpush.msra.mxu0 %v64_v3  ;;  %v59_v9 = vld [vmem:[#allocation2 + $0x48] sm:$0xff]  ;;  %v58_v10 = vld [vmem:[#allocation2 + $0x40] sm:$0xff]  ;;  %v57_v11 = vld [vmem:[#allocation2 + $0x38] sm:$0xff] }
   0xa   :  { %115 = vmatpush.msra.mxu1 %v64_v3  ;;  %v56_v12 = vld [vmem:[#allocation2 + $0x30] sm:$0xff]  ;;  %v55_v13 = vld [vmem:[#allocation2 + $0x28] sm:$0xff]  ;;  %v54_v14 = vld [vmem:[#allocation2 + $0x20] sm:$0xff] }
   0xb   :  { %72 = vmatpush.msra.mxu0 %v63_v4  ;;  %v53_v15 = vld [vmem:[#allocation2 + $0x18] sm:$0xff]  ;;  %v52_v16 = vld [vmem:[#allocation2 + $0x10] sm:$0xff]  ;;  %v51_v17 = vld [vmem:[#allocation2 + $0x8] sm:$0xff] }
   0xc   :  { %116 = vmatpush.msra.mxu1 %v63_v4  ;;  %v50_v18 = vld [vmem:[#allocation2] sm:$0xff]  ;;  %v35_v22 = vld [vmem:[%s247_s1 + $0x8] sm:$0xff] }
   0xd   :  { %73 = vmatpush.msra.mxu0 %v62_v5  ;;  %v34_v19 = vld [vmem:[%s247_s1] sm:$0xff] }
   0xe   :  { %117 = vmatpush.msra.mxu1 %v62_v5  ;;  %v136_v25 = vld [vmem:[%s249_s3] ss:$0 sm:$0xff] }
   0xf   :  { %74 = vmatpush.msra.mxu0 %v61_v7 }
  0x10   :  { %45 = vperm.xlu0 %135, %v37_v6   ;;  %118 = vmatpush.msra.mxu1 %v61_v7 }
  0x11   :  { %75 = vmatpush.msra.mxu0 %v60_v8 }
  0x12   :  { %119 = vmatpush.msra.mxu1 %v60_v8 }
  0x13   :  { %76 = vmatpush.msra.mxu0 %v59_v9 }
  0x14   :  { %120 = vmatpush.msra.mxu1 %v59_v9 }
  0x15   :  { %77 = vmatpush.msra.mxu0 %v58_v10 }
  0x16   :  { %121 = vmatpush.msra.mxu1 %v58_v10 }
  0x17   :  { %78 = vmatpush.msra.mxu0 %v57_v11 }
  0x18   :  { %122 = vmatpush.msra.mxu1 %v57_v11 }
  0x19   :  { %79 = vmatpush.msra.mxu0 %v56_v12 }
  0x1a   :  { %123 = vmatpush.msra.mxu1 %v56_v12 }
  0x1b   :  { %80 = vmatpush.msra.mxu0 %v55_v13 }
  0x1c   :  { %124 = vmatpush.msra.mxu1 %v55_v13 }
  0x1d   :  { %81 = vmatpush.msra.mxu0 %v54_v14 }
  0x1e   :  { %125 = vmatpush.msra.mxu1 %v54_v14 }
  0x1f   :  { %82 = vmatpush.msra.mxu0 %v53_v15 }
  0x20   :  { %126 = vmatpush.msra.mxu1 %v53_v15 }
  0x21   :  { %83 = vmatpush.msra.mxu0 %v52_v16 }
  0x22   :  { %127 = vmatpush.msra.mxu1 %v52_v16 }
  0x23   :  { %84 = vmatpush.msra.mxu0 %v51_v17 }
  0x24   :  { %128 = vmatpush.msra.mxu1 %v51_v17 }
  0x25   :  { %85 = vmatpush.msra.mxu0 %v50_v18 }
  0x26   :  { %129 = vmatpush.msra.mxu1 %v50_v18 }
  0x7a   :  { %v41_v20 = vpop.permute.xlu0 %40 }
  0x7b   :  { %v48_v21 = vmul.f32 %v41_v20, %v34_v19 }
  0x7d   :  { %86 = vmatmul.f32.vlgmr.msra.gmra.mxu0 %v48_v21 }
  0x82   :  { %v46_v23 = vpop.permute.xlu0 %45 }
  0x83   :  { %v49_v24 = vmul.f32 %v46_v23, %v35_v22 }
  0x85   :  { %89 = vmatmul.f32.vlgmr.msra.gmra.mxu1 %v49_v24 }
  0xfa   :  { %v87_v26 = vpop.f32.mrf.mxu0 }
  0xfb   :  { %v88_v27 = vadd.f32 %v136_v25, %v87_v26 }
  0xfd   :  { %93 = vst [vmem:[#allocation5] sm:$0xff] %v88_v27 }
 0x102   :  { %v90_v28 = vpop.f32.mrf.mxu1 }
 0x103   :  { %v91_v29 = vadd.f32 %v136_v25, %v90_v28 }
 0x105   :  { %94 = vst [vmem:[#allocation5 + $0x8] sm:$0xff] %v91_v29 }
 0x106   :  { %107 = dma.vmem_to_hbm [thread:$0]  %s100_s5, 256, %s102_s8, [#allocation4], %s190_s20, %s190_s20, %s191_s21  }
 0x107   :  { %187 = dma.done.wait [#allocation4], 256  }
 0x108   :  { %188 = vsyncadd [#allocation4], 4294967040 }
 0x109   :  { %112 = vsyncpa [#allocation3], 1 }
 0x10a   :  { %113 = vsyncpa [#allocation4], 1 }

</bundles_post_ra>
